<compile_context>
chip_gen: v6e
topology: v6e:2x2x1
jax: 0.10.0
libtpu: 0.0.40
codegen_flags: <defaults>
</compile_context>

<pallas_src>
import functools

import jax
import jax.numpy as jnp
from jax import lax
from jax.experimental import pallas as pl
from jax.experimental.pallas import tpu as pltpu

EPS = 1e-5
NEG_SLOPE = 0.01  # nn.LeakyReLU() default


# ----------------------------------------------------------------------------
# Pass 0: per-channel sum / sum-of-squares (one-pass BN statistics)
# ----------------------------------------------------------------------------
def _stats_kernel(x_ref, st_ref, *, h, w, c):
    x = x_ref[0].astype(jnp.float32).reshape(h * w, c)
    s = jnp.sum(x, axis=0, keepdims=True)
    sq = jnp.sum(x * x, axis=0, keepdims=True)
    st_ref[0] = jnp.concatenate([s, sq], axis=0)          # (2, C)


# ----------------------------------------------------------------------------
# Pass 1: bn1-folded 3x3 reflect-pad conv as ONE im2col MXU matmul (K=9*Cin)
#         + partial bn2 statistics of the conv output (from the f32 values)
# ----------------------------------------------------------------------------
def _conv3x3_kernel(x_ref, w_ref, b_ref, y_ref, st_ref,
                    *, h, w, cin, cout, mxu_dtype):
    x = x_ref[0].astype(jnp.float32)                      # (H, W, Cin)
    # reflect pad=1 (PyTorch 'reflect'), done once per image
    xp = jnp.concatenate([x[1:2], x, x[h - 2:h - 1]], axis=0)
    xp = jnp.concatenate([xp[:, 1:2], xp, xp[:, w - 2:w - 1]], axis=1)
    xp = xp.astype(mxu_dtype)                             # single cast for MXU
    # im2col: tap order (kh, kw, ci) matches the folded-weight row order.
    cols = [xp[kh:kh + h, kw:kw + w, :].reshape(h * w, cin)
            for kh in range(3) for kw in range(3)]
    patches = jnp.concatenate(cols, axis=-1)              # (H*W, 9*Cin)
    y = jnp.dot(patches, w_ref[...], preferred_element_type=jnp.float32)
    y = y + b_ref[...]                                    # (H*W, Cout) f32
    y_ref[0] = y.reshape(h, w, cout).astype(y_ref.dtype)
    s = jnp.sum(y, axis=0, keepdims=True)
    sq = jnp.sum(y * y, axis=0, keepdims=True)
    st_ref[0] = jnp.concatenate([s, sq], axis=0)


# ----------------------------------------------------------------------------
# Pass 2: bn2 (precomputed scale/shift) -> LeakyReLU -> 1x1 conv (MXU)
#         + partial bn2 statistics (the module applies bn2 a second time)
# ----------------------------------------------------------------------------
def _bn_act_conv1x1_kernel(y_ref, sc_ref, sh_ref, w_ref, b_ref, z_ref, st_ref,
                           *, h, w, c, mxu_dtype):
    y = y_ref[0].astype(jnp.float32).reshape(h * w, c)
    a = y * sc_ref[...] + sh_ref[...]
    a = jnp.where(a >= 0, a, NEG_SLOPE * a)
    z = jnp.dot(a.astype(mxu_dtype), w_ref[...],
                preferred_element_type=jnp.float32) + b_ref[...]
    z_ref[0] = z.reshape(h, w, c).astype(z_ref.dtype)
    s = jnp.sum(z, axis=0, keepdims=True)
    sq = jnp.sum(z * z, axis=0, keepdims=True)
    st_ref[0] = jnp.concatenate([s, sq], axis=0)


# ----------------------------------------------------------------------------
# Pass 3: bn2 -> LeakyReLU -> x2 bilinear upsample (align_corners=False),
#         fused epilogue; writes 4 sub-pixel planes into a dense block
# ----------------------------------------------------------------------------
def _bn_act_upsample_kernel(z_ref, sc_ref, sh_ref, o_ref, *, h, w, c):
    z = z_ref[0].astype(jnp.float32)                      # (H, W, C)
    t = z * sc_ref[...].reshape(1, 1, c) + sh_ref[...].reshape(1, 1, c)
    t = jnp.where(t >= 0, t, NEG_SLOPE * t)
    # along H: out[2i] = .25*t[i-1] + .75*t[i]; out[2i+1] = .75*t[i] + .25*t[i+1]
    up_h = jnp.concatenate([t[:1], t[:-1]], axis=0)
    dn_h = jnp.concatenate([t[1:], t[-1:]], axis=0)
    even_h = 0.25 * up_h + 0.75 * t
    odd_h = 0.75 * t + 0.25 * dn_h

    def winterp(a):
        up_w = jnp.concatenate([a[:, :1], a[:, :-1]], axis=1)
        dn_w = jnp.concatenate([a[:, 1:], a[:, -1:]], axis=1)
        return 0.25 * up_w + 0.75 * a, 0.75 * a + 0.25 * dn_w

    ee, eo = winterp(even_h)      # even output rows
    oe, oo = winterp(odd_h)       # odd output rows
    o_ref[0, 0] = ee.astype(o_ref.dtype)   # (row even, col even)
    o_ref[0, 1] = eo.astype(o_ref.dtype)   # (row even, col odd)
    o_ref[0, 2] = oe.astype(o_ref.dtype)   # (row odd,  col even)
    o_ref[0, 3] = oo.astype(o_ref.dtype)   # (row odd,  col odd)


# ----------------------------------------------------------------------------
# Wrapper (NCHW in / NCHW out, like the PyTorch module)
# ----------------------------------------------------------------------------
def _finalize_bn(st, gamma, beta, count):
    """Per-image (sum, sumsq) partials -> per-channel BN scale/shift."""
    s = jnp.sum(st[:, 0, :], axis=0)
    sq = jnp.sum(st[:, 1, :], axis=0)
    mean = s / count
    var = sq / count - mean * mean          # biased variance (PyTorch training)
    scale = gamma * lax.rsqrt(var + EPS)
    shift = beta - mean * scale
    return scale, shift


def up_block_forward(x_nchw, params, *, mxu_dtype=jnp.bfloat16):
    n, cin, h, w = x_nchw.shape
    w1_hwio = params["w1_hwio"]                 # (3, 3, Cin, Cout)
    cout = w1_hwio.shape[-1]
    assert h >= 2 and w >= 2, "reflect pad=1 requires H >= 2 and W >= 2"

    # Inter-pass activation dtype: bf16 on the default path (halves HBM
    # traffic for the two largest intermediates); f32 on the validation path.
    inter_dtype = jnp.float32 if mxu_dtype == jnp.float32 else jnp.bfloat16

    x = jnp.transpose(x_nchw, (0, 2, 3, 1))     # NCHW -> NHWC (interface glue)

    cparams = pltpu.CompilerParams(
        dimension_semantics=("parallel",),       # megacore on v7x
        vmem_limit_bytes=48 * 1024 * 1024)       # >= tile working set, < v7x 64 MiB
    count = float(n * h * w)

    # ---- pass 0: bn1 batch statistics of x ----
    st0 = pl.pallas_call(
        functools.partial(_stats_kernel, h=h, w=w, c=cin),
        grid=(n,),
        in_specs=[pl.BlockSpec((1, h, w, cin), lambda i: (i, 0, 0, 0))],
        out_specs=pl.BlockSpec((1, 2, cin), lambda i: (i, 0, 0)),
        out_shape=jax.ShapeDtypeStruct((n, 2, cin), jnp.float32),
        compiler_params=cparams,
    )(x)
    scale1, shift1 = _finalize_bn(st0, params["g1"], params["be1"], count)

    # Fold bn1 into conv1 weights/bias (exact: reflect pad commutes with a
    # per-channel affine).  Tiny O(9*Cin*Cout) math, done once in f32.
    w1f = (w1_hwio * scale1[None, None, :, None]).reshape(9 * cin, cout)
    b1f = params["b1"] + jnp.sum(w1_hwio * shift1[None, None, :, None],
                                 axis=(0, 1, 2))
    w1f = w1f.astype(mxu_dtype)
    b1f = b1f.reshape(1, cout).astype(jnp.float32)

    # ---- pass 1: conv3x3 (bn1 folded, single im2col matmul) + bn2 stats ----
    # TODO(synk): for very large H*W, additionally tile rows within each image
    # (halo-aware im2col) so a single image tile stays inside v7x's 64 MiB VMEM.
    y1, st1 = pl.pallas_call(
        functools.partial(_conv3x3_kernel, h=h, w=w, cin=cin, cout=cout,
                          mxu_dtype=mxu_dtype),
        grid=(n,),
        in_specs=[pl.BlockSpec((1, h, w, cin), lambda i: (i, 0, 0, 0)),
                  pl.BlockSpec((9 * cin, cout), lambda i: (0, 0)),
                  pl.BlockSpec((1, cout), lambda i: (0, 0))],
        out_specs=[pl.BlockSpec((1, h, w, cout), lambda i: (i, 0, 0, 0)),
                   pl.BlockSpec((1, 2, cout), lambda i: (i, 0, 0))],
        out_shape=[jax.ShapeDtypeStruct((n, h, w, cout), inter_dtype),
                   jax.ShapeDtypeStruct((n, 2, cout), jnp.float32)],
        compiler_params=cparams,
    )(x, w1f, b1f)
    scale2a, shift2a = _finalize_bn(st1, params["g2"], params["be2"], count)

    # ---- pass 2: bn2 -> LeakyReLU -> conv1x1 + bn2 stats (second use) ----
    y2, st2 = pl.pallas_call(
        functools.partial(_bn_act_conv1x1_kernel, h=h, w=w, c=cout,
                          mxu_dtype=mxu_dtype),
        grid=(n,),
        in_specs=[pl.BlockSpec((1, h, w, cout), lambda i: (i, 0, 0, 0)),
                  pl.BlockSpec((1, cout), lambda i: (0, 0)),
                  pl.BlockSpec((1, cout), lambda i: (0, 0)),
                  pl.BlockSpec((cout, cout), lambda i: (0, 0)),
                  pl.BlockSpec((1, cout), lambda i: (0, 0))],
        out_specs=[pl.BlockSpec((1, h, w, cout), lambda i: (i, 0, 0, 0)),
                   pl.BlockSpec((1, 2, cout), lambda i: (i, 0, 0))],
        out_shape=[jax.ShapeDtypeStruct((n, h, w, cout), inter_dtype),
                   jax.ShapeDtypeStruct((n, 2, cout), jnp.float32)],
        compiler_params=cparams,
    )(y1, scale2a.reshape(1, cout), shift2a.reshape(1, cout),
      params["w2_io"].astype(mxu_dtype),
      params["b2"].reshape(1, cout).astype(jnp.float32))
    scale2b, shift2b = _finalize_bn(st2, params["g2"], params["be2"], count)

    # ---- pass 3: bn2 -> LeakyReLU -> fused x2 bilinear upsample ----
    planes = pl.pallas_call(
        functools.partial(_bn_act_upsample_kernel, h=h, w=w, c=cout),
        grid=(n,),
        in_specs=[pl.BlockSpec((1, h, w, cout), lambda i: (i, 0, 0, 0)),
                  pl.BlockSpec((1, cout), lambda i: (0, 0)),
                  pl.BlockSpec((1, cout), lambda i: (0, 0))],
        out_specs=pl.BlockSpec((1, 4, h, w, cout), lambda i: (i, 0, 0, 0, 0)),
        out_shape=jax.ShapeDtypeStruct((n, 4, h, w, cout), jnp.float32),
        compiler_params=cparams,
    )(y2, scale2b.reshape(1, cout), shift2b.reshape(1, cout))

    # Single exit transpose interleaves the sub-pixel planes AND converts to
    # NCHW: (N,2,2,H,W,C) -> (N,C,H,2,W,2) -> (N,C,2H,2W).
    planes = planes.reshape(n, 2, 2, h, w, cout)
    out = jnp.transpose(planes, (0, 5, 3, 1, 4, 2)).reshape(n, cout, 2 * h, 2 * w)
    return out


# ----------------------------------------------------------------------------
# Pure-JAX reference (independent formulation, full f32 precision)
# ----------------------------------------------------------------------------
def _bn_train(x, gamma, beta):
    m = jnp.mean(x, axis=(0, 2, 3), keepdims=True)
    v = jnp.mean((x - m) ** 2, axis=(0, 2, 3), keepdims=True)
    return (x - m) / jnp.sqrt(v + EPS) * gamma.reshape(1, -1, 1, 1) \
        + beta.reshape(1, -1, 1, 1)


def _leaky(x):
    return jnp.where(x >= 0, x, NEG_SLOPE * x)


def _bilinear_up2(x):  # NCHW, align_corners=False (matches PyTorch default)
    n, c, h, w = x.shape

    def idx(size):
        out = jnp.arange(2 * size)
        src = jnp.maximum((out + 0.5) * 0.5 - 0.5, 0.0)
        i0 = jnp.floor(src).astype(jnp.int32)
        i1 = jnp.minimum(i0 + 1, size - 1)
        return i0, i1, src - i0

    h0, h1, lh = idx(h)
    w0, w1, lw = idx(w)
    xh = x[:, :, h0, :] * (1 - lh)[None, None, :, None] \
        + x[:, :, h1, :] * lh[None, None, :, None]
    return xh[:, :, :, w0] * (1 - lw)[None, None, None, :] \
        + xh[:, :, :, w1] * lw[None, None, None, :]


def up_block_reference(x, p):
    x1 = _bn_train(x, p["g1"], p["be1"])
    x1 = jnp.pad(x1, ((0, 0), (0, 0), (1, 1), (1, 1)), mode="reflect")
    x1 = lax.conv_general_dilated(x1, p["w1_oihw"], (1, 1), "VALID",
                                  dimension_numbers=("NCHW", "OIHW", "NCHW"),
                                  precision=lax.Precision.HIGHEST)
    x1 = x1 + p["b1"].reshape(1, -1, 1, 1)
    x1 = _leaky(_bn_train(x1, p["g2"], p["be2"]))
    x2 = lax.conv_general_dilated(x1, p["w2_oihw"], (1, 1), "VALID",
                                  dimension_numbers=("NCHW", "OIHW", "NCHW"),
                                  precision=lax.Precision.HIGHEST)
    x2 = x2 + p["b2"].reshape(1, -1, 1, 1)
    x2 = _leaky(_bn_train(x2, p["g2"], p["be2"]))
    return _bilinear_up2(x2)


if __name__ == "__main__":
    key = jax.random.PRNGKey(0)
    # Module defaults are 128 channels -> lane-dense on TPU. Small spatial size.
    N, CIN, COUT, H, W = 2, 128, 128, 16, 16
    ks = jax.random.split(key, 9)

    x = jax.random.normal(ks[0], (N, CIN, H, W), jnp.float32)
    w1_oihw = 0.1 * jax.random.normal(ks[1], (COUT, CIN, 3, 3), jnp.float32)
    b1 = 0.1 * jax.random.normal(ks[2], (COUT,), jnp.float32)
    w2_oihw = 0.1 * jax.random.normal(ks[3], (COUT, COUT, 1, 1), jnp.float32)
    b2 = 0.1 * jax.random.normal(ks[4], (COUT,), jnp.float32)
    g1 = 1.0 + 0.1 * jax.random.normal(ks[5], (CIN,), jnp.float32)
    be1 = 0.1 * jax.random.normal(ks[6], (CIN,), jnp.float32)
    g2 = 1.0 + 0.1 * jax.random.normal(ks[7], (COUT,), jnp.float32)
    be2 = 0.1 * jax.random.normal(ks[8], (COUT,), jnp.float32)

    params = {
        # kernel layouts
        "w1_hwio": jnp.transpose(w1_oihw, (2, 3, 1, 0)),       # (3,3,Cin,Cout)
        "b1": b1,
        "w2_io": jnp.transpose(w2_oihw[:, :, 0, 0], (1, 0)),   # (Cin, Cout)
        "b2": b2,
        "g1": g1, "be1": be1, "g2": g2, "be2": be2,
        # original layouts, only for the pure-JAX reference
        "w1_oihw": w1_oihw, "w2_oihw": w2_oihw,
    }

    ref = up_block_reference(x, params)

    # all-f32 path: tight check (catches layout / dtype bugs)
    out32 = jax.block_until_ready(up_block_forward(x, params,
                                                   mxu_dtype=jnp.float32))
    assert out32.shape == (N, COUT, 2 * H, 2 * W), out32.shape
    err32 = float(jnp.max(jnp.abs(out32 - ref)))
    assert jnp.allclose(out32, ref, rtol=2e-4, atol=2e-4), \
        f"f32 path max abs err {err32}"

    # default path (bf16 MXU operands + bf16 intermediates): looser check
    outbf = jax.block_until_ready(up_block_forward(x, params,
                                                   mxu_dtype=jnp.bfloat16))
    errbf = float(jnp.max(jnp.abs(outbf - ref)))
    assert errbf < 0.15, f"bf16 path max abs err {errbf}"

    print("KERNEL_OK")
</pallas_src>

<mosaic_0001>
module attributes {stable_mosaic.version = 11 : i64} {
  func.func @_stats_kernel(%arg0: i32, %arg1: memref<1x16x16x128xf32, #tpu.memory_space<vmem>>, %arg2: memref<1x2x128xf32, #tpu.memory_space<vmem>>) attributes {dimension_semantics = [#tpu.dimension_semantics<parallel>], iteration_bounds = array<i64: 2>, scalar_prefetch = 0 : i64, scratch_operands = 0 : i64, tpu.core_type = #tpu.core_type<tc>, window_params = [{transform_indices = @transform_0, window_bounds = array<i64: 1, 16, 16, 128>}, {transform_indices = @transform_1, window_bounds = array<i64: 1, 2, 128>}]} {
    %c0 = arith.constant 0 : index
    %c0_0 = arith.constant 0 : index
    %c0_1 = arith.constant 0 : index
    %c0_2 = arith.constant 0 : index
    %0 = vector.load %arg1[%c0, %c0_0, %c0_1, %c0_2] : memref<1x16x16x128xf32, #tpu.memory_space<vmem>>, vector<1x16x16x128xf32>
    %1 = vector.shape_cast %0 : vector<1x16x16x128xf32> to vector<16x16x128xf32>
    %2 = vector.shape_cast %1 : vector<16x16x128xf32> to vector<256x128xf32>
    %cst = arith.constant dense<0.000000e+00> : vector<128xf32>
    %3 = vector.multi_reduction <add>, %2, %cst [0] : vector<256x128xf32> to vector<128xf32>
    %4 = vector.shape_cast %3 : vector<128xf32> to vector<1x128xf32>
    %5 = arith.mulf %2, %2 : vector<256x128xf32>
    %cst_3 = arith.constant dense<0.000000e+00> : vector<128xf32>
    %6 = vector.multi_reduction <add>, %5, %cst_3 [0] : vector<256x128xf32> to vector<128xf32>
    %7 = vector.shape_cast %6 : vector<128xf32> to vector<1x128xf32>
    %8 = tpu.concatenate %4, %7 in 0 : vector<1x128xf32>, vector<1x128xf32> -> vector<2x128xf32>
    %c0_4 = arith.constant 0 : index
    %c0_5 = arith.constant 0 : index
    %c0_6 = arith.constant 0 : index
    %9 = vector.load %arg2[%c0_4, %c0_5, %c0_6] : memref<1x2x128xf32, #tpu.memory_space<vmem>>, vector<1x2x128xf32>
    %10 = vector.shape_cast %9 : vector<1x2x128xf32> to vector<2x128xf32>
    %11 = vector.shape_cast %8 : vector<2x128xf32> to vector<1x2x128xf32>
    tpu.vector_store %arg2[%c0_4, %c0_5, %c0_6], %11 {strides = array<i32>} : memref<1x2x128xf32, #tpu.memory_space<vmem>>, vector<1x2x128xf32>,
    return
  }
  func.func @transform_0(%arg0: i32) -> (i32, i32, i32, i32) {
    %c0_i32 = arith.constant 0 : i32
    %c0_i32_0 = arith.constant 0 : i32
    %c0_i32_1 = arith.constant 0 : i32
    %c0_i32_2 = arith.constant 0 : i32
    return %arg0, %c0_i32, %c0_i32_0, %c0_i32_1 : i32, i32, i32, i32
  }
  func.func @transform_1(%arg0: i32) -> (i32, i32, i32) {
    %c0_i32 = arith.constant 0 : i32
    %c0_i32_0 = arith.constant 0 : i32
    %c0_i32_1 = arith.constant 0 : i32
    return %arg0, %c0_i32, %c0_i32_0 : i32, i32, i32
  }
}

</mosaic_0001>

<bundles_post_ra>
// kernel: tpu_custom_call.1
= control target key start
LH: loop header
LB: loop body
LE: loop exit
PB: predicated region body
PF: predicated region fallthrough
CT: control target
= control target key end

     0   :  { %6 = vsyncpa [#allocation3], 0  ;;  %s711_s0 = inlined_call_operand.hbm [shape: f32[2,16,16,128], index: 0, kind: input, shape index: {}]   ;;  %s712_s1 = inlined_call_operand.hbm [shape: f32[2,2,128], index: 1, kind: output, shape index: {}]  }
   0x1   :  { %8 = vsyncpa [#allocation3 + $0x1], 0 }
   0x2   :  { %9 = vsyncpa [#allocation4], 0 }
   0x3   :  { %11 = vsyncpa [#allocation4 + $0x1], 0  ;;  %s530_s6 = smov 0   ;;  %s532_s7 = smov 0  }
   0x4   :  { %s534_s8 = smov 0   ;;  %s536_s9 = smov 0  }
   0x5 LB: > { %s551_s10 = sadd.s32 4294967295, %s514_s9   ;;  %s360_s11 = sadd.s32 4294967294, %s514_s9   ;;  %s514_s9 = sphi %s536_s9, %s727_s9   ;;  %s510_s8 = sphi %s534_s8, %s726_s8   ;;  %s506_s7 = sphi %s532_s7, %s725_s7   ;;  %s502_s6 = sphi %s530_s6, %s724_s6  }
   0x6   : > { %s555_s12 = sadd.s32 1, %s514_s9   ;;  %s24_s13 = sadd.s32 1, %s510_s8 }
   0x7   : > { %s21_s14 = ssub.s32 %s514_s9, %s555_s12  ;;  %p31_p0 = scmp.ne.s32.totalorder %s510_s8, %s506_s7 }
   0x8   : > { %p22_p1 = scmp.eq.s32.totalorder %s21_s14, 0  ;;  %p32_p2 = scmp.eq.s32.totalorder %s514_s9, 0 }
   0x9   : > { %p37_p3 = scmp.ne.s32.totalorder %s506_s7, %s502_s6  ;;  %p38_p4 = scmp.eq.s32.totalorder %s551_s10, 0 }
   0xa   : > { %s567_s15 = scalar_select %p22_p1, %s510_s8, %s24_s13  }
   0xb   : > { %p569_p5 = por %p32_p2, %p31_p0  ;;  %p573_p6 = por %p38_p4, %p37_p3 }
   0xc   : > { %p61_p7 = scmp.eq.s32.totalorder %s551_s10, 1  ;;  %p67_p8 = scmp.eq.s32.totalorder %s360_s11, 1 }
   0xd   : > { %s716_s17 = scalar_select %p573_p6, 1, 0 }
   0xe   : > { %p386_p10 = scmp.lt.s32.totalorder %s514_s9, 2  ;;  %p580_p11 = por %p61_p7, %p31_p0 }
   0xf   : > { %p584_p12 = por %p67_p8, %p37_p3  ;;  %s87_s20 = sand.u32 1, %s510_s8  }
  0x10   : > { %s717_s18 = scalar_select %p580_p11, 1, 0 }
  0x11   : > { %s718_s19 = scalar_select %p584_p12, 1, 0 }
  0x12   : > { %s373_s21 = sshll.u32 %s514_s9, 12  ;;  %s363_s22 = sshll.u32 %s87_s20, 8 }
  0x13   : > { %s593_s25 = scalar_lea.hbm %s711_s0, %s373_s21  ;;  %s91_s26 = scalar_lea.vmem [#allocation2], %s363_s22 }
  0x14   : > { %s98_s27 = sshll.u32 %s91_s26, 4  ;;  %p597_p13 = pnand %p386_p10, %p569_p5  ;;  %s601_s27 = int_to_ptr.vmem [resolvable:$true] %s98_s27 }
  0x15   : > { %s603_s29 = scalar_lea.sflag [#allocation3], %s87_s20  ;;  %s422_s30 = scalar_lea.hbm %s593_s25, 4096 }
  0x16   : > { %p423_p0 = scmp.ne.s32.totalorder %s593_s25, %s422_s30  ;;  %p424_p1 = pneg %p597_p13 }
  0x17   : > { %s427_s4 = scalar_lea.hbm %s711_s0, 8192  ;;  %p428_p4 = scmp.lt.s32.totalorder %s593_s25, %s711_s0 }
  0x18   : > { %p425_p2 = pnand %p424_p1, %p423_p0  ;;  %p429_p5 = scmp.lt.s32.totalorder %s427_s4, %s422_s30 }
  0x1a   : > { %p426_p3 = pneg %p425_p2  ;;  %p430_p7 = por %p429_p5, %p428_p4 }
  0x1c   : > { %p431_p8 = pnand %p430_p7, %p426_p3 }
  0x1e   : > { %434 = shalt.err (!%p431_p8)
}
  0x1f   : > { %s435_s13 = scalar_lea.vmem %s601_s27, 4096  ;;  %s516_s14 = smov [#allocation2]  }
  0x20   : > { %p436_p10 = scmp.ne.s32.totalorder %s601_s27, %s435_s13  ;;  %s440_s16 = sshll.u32 %s516_s14, 4  ;;  %s441_s16 = int_to_ptr.vmem [resolvable:$false] %s440_s16 }
  0x21   : > { %s442_s20 = scalar_lea.vmem %s441_s16, 8192  ;;  %p443_p2 = scmp.lt.s32.totalorder %s601_s27, %s441_s16 }
  0x22   : > { %p438_p9 = pnand %p436_p10, %p424_p1  ;;  %p444_p12 = scmp.lt.s32.totalorder %s442_s20, %s435_s13 }
  0x24   : > { %p439_p0 = pneg %p438_p9  ;;  %p445_p11 = por %p444_p12, %p443_p2 }
  0x26   : > { %p446_p6 = pnand %p445_p11, %p439_p0 }
  0x28   : > { %449 = shalt.err (!%p446_p6)
}
  0x29   : > { %s517_s21 = smov 128   ;;  %s518_s22 = smov 8  }
  0x2a   : > { %381 = dma.hbm_to_vmem [thread:$0]  (!%p597_p13), %s593_s25, 4096, %s601_s27, %s603_s29, %s517_s21, %s517_s21, %s518_s22  }
  0x2b   : > { %p366_p9 = scmp.ge.s32.totalorder %s514_s9, 1  ;;  %p106_p1 = scmp.lt.s32.totalorder %s514_s9, 3 }
  0x2d   : > { %p107_p3 = pnand %p366_p9, %p106_p1 }
  0x2e   : > { %s627_s23 = sand.u32 (!%p107_p3), 1, %s506_s7   ;;  %p720_p6 = scmp.ne.s32.totalorder (!%p107_p3), %s716_s17, 0 }
  0x2f   : > { %110 = sbr.rel (%p107_p3) target bundleno = 144 (0x90), region = 24  ;;  %s367_s24 = sshll.u32 (!%p107_p3), %s627_s23, 8 }
  0x30   : > { %s113_s26 = scalar_lea.sflag (!%p107_p3), [#allocation3], %s627_s23  ;;  %s631_s30 = scalar_lea.vmem (!%p107_p3), [#allocation2], %s367_s24 }
  0x34   : > { %493 = dma.done.wait (%p720_p6), %s113_s26, 4096  }
  0x35   : > { %495 = vsyncadd (%p720_p6), %s113_s26, 4294963200  ;;  %v135_v0 = vld [vmem:[%s631_s30] sm:$0xff]  ;;  %v136_v1 = vld [vmem:[%s631_s30 + $0x8] sm:$0xff]  ;;  %s368_s17 = sshll.u32 %s627_s23, 1  ;;  %s370_s28 = sshll.u32 %s551_s10, 5  ;;  %vm273_vm0 = vcmask 1040384  }
  0x36   : > { %v137_v2 = vld [vmem:[%s631_s30 + $0x10] sm:$0xff]  ;;  %v138_v3 = vld [vmem:[%s631_s30 + $0x18] sm:$0xff]  ;;  %v167_v4 = vadd.f32 %v136_v1, %v135_v0  ;;  %v204_v5 = vmul.f32 %v135_v0, %v135_v0  ;;  %v205_v6 = vmul.f32 %v136_v1, %v136_v1  ;;  %v139_v8 = vld [vmem:[%s631_s30 + $0x20] sm:$0xff]  ;;  %s134_s25 = scalar_lea.vmem [#allocation5], %s368_s17  ;;  %s288_s3 = scalar_lea.hbm %s712_s1, %s370_s28 }
  0x37   : > { %v206_v7 = vmul.f32 %v137_v2, %v137_v2  ;;  %v207_v10 = vmul.f32 %v138_v3, %v138_v3  ;;  %v140_v12 = vld [vmem:[%s631_s30 + $0x28] sm:$0xff]  ;;  %v208_v14 = vmul.f32 %v139_v8, %v139_v8  ;;  %v141_v16 = vld [vmem:[%s631_s30 + $0x30] sm:$0xff]  ;;  %v142_v20 = vld [vmem:[%s631_s30 + $0x38] sm:$0xff]  ;;  %s290_s27 = sshll.u32 %s134_s25, 4  ;;  %s277_s4 = scalar_lea.sflag [#allocation4], %s627_s23  ;;  %s671_s27 = int_to_ptr.vmem [resolvable:$true] %s290_s27 }
  0x38   : > { %v168_v9 = vadd.f32 %v167_v4, %v137_v2  ;;  %v236_v11 = vadd.f32 %v205_v6, %v204_v5  ;;  %v209_v18 = vmul.f32 %v140_v12, %v140_v12  ;;  %v210_v22 = vmul.f32 %v141_v16, %v141_v16  ;;  %v143_v24 = vld [vmem:[%s631_s30 + $0x40] sm:$0xff]  ;;  %v144_v28 = vld [vmem:[%s631_s30 + $0x48] sm:$0xff]  ;;  %v145_v32 = vld [vmem:[%s631_s30 + $0x50] sm:$0xff]  ;;  %s450_s5 = scalar_lea.vmem %s671_s27, 32  ;;  %p721_p12 = scmp.ne.s32.totalorder %s717_s18, 0 }
  0x39   : > { %v211_v26 = vmul.f32 %v142_v20, %v142_v20  ;;  %v212_v30 = vmul.f32 %v143_v24, %v143_v24  ;;  %v213_v34 = vmul.f32 %v144_v28, %v144_v28  ;;  %v146_v36 = vld [vmem:[%s631_s30 + $0x58] sm:$0xff]  ;;  %v214_v38 = vmul.f32 %v145_v32, %v145_v32  ;;  %v147_v40 = vld [vmem:[%s631_s30 + $0x60] sm:$0xff]  ;;  %v148_v44 = vld [vmem:[%s631_s30 + $0x68] sm:$0xff]  ;;  %p451_p11 = scmp.ne.s32.totalorder %s671_s27, %s450_s5  ;;  %s519_s10 = smov [#allocation5]  }
  0x3a   : > { %v169_v13 = vadd.f32 %v168_v9, %v138_v3  ;;  %v237_v15 = vadd.f32 %v236_v11, %v206_v7  ;;  %v215_v42 = vmul.f32 %v146_v36, %v146_v36  ;;  %v216_v46 = vmul.f32 %v147_v40, %v147_v40  ;;  %v149_v48 = vld [vmem:[%s631_s30 + $0x70] sm:$0xff]  ;;  %v150_v52 = vld [vmem:[%s631_s30 + $0x78] sm:$0xff]  ;;  %v151_v56 = vld [vmem:[%s631_s30 + $0x80] sm:$0xff]  ;;  %s454_s11 = sshll.u32 %s519_s10, 4  ;;  %s455_s11 = int_to_ptr.vmem [resolvable:$false] %s454_s11 }
  0x3b   : > { %v217_v50 = vmul.f32 %v148_v44, %v148_v44  ;;  %v218_v54 = vmul.f32 %v149_v48, %v149_v48  ;;  %v219_v58 = vmul.f32 %v150_v52, %v150_v52  ;;  %v152_v60 = vld [vmem:[%s631_s30 + $0x88] sm:$0xff]  ;;  %v220_v62 = vmul.f32 %v151_v56, %v151_v56  ;;  %v153_v0 = vld [vmem:[%s631_s30 + $0x90] sm:$0xff]  ;;  %v154_v4 = vld [vmem:[%s631_s30 + $0x98] sm:$0xff]  ;;  %p452_p13 = pnand %p451_p11, %p721_p12  ;;  %s456_s13 = scalar_lea.vmem %s455_s11, 64 }
  0x3c   : > { %v170_v17 = vadd.f32 %v169_v13, %v139_v8  ;;  %v238_v19 = vadd.f32 %v237_v15, %v207_v10  ;;  %v221_v2 = vmul.f32 %v152_v60, %v152_v60  ;;  %v222_v6 = vmul.f32 %v153_v0, %v153_v0  ;;  %v155_v8 = vld [vmem:[%s631_s30 + $0xa0] sm:$0xff]  ;;  %p457_p5 = scmp.lt.s32.totalorder %s671_s27, %s455_s11  ;;  %p458_p7 = scmp.lt.s32.totalorder %s456_s13, %s450_s5 }
  0x3d   : > { %v223_v10 = vmul.f32 %v154_v4, %v154_v4  ;;  %p453_p4 = pneg %p452_p13 }
  0x3e   : > { %v171_v21 = vadd.f32 %v170_v17, %v140_v12  ;;  %v239_v23 = vadd.f32 %v238_v19, %v208_v14  ;;  %v156_v12 = vld [vmem:[%s631_s30 + $0xa8] sm:$0xff]  ;;  %v224_v14 = vmul.f32 %v155_v8, %v155_v8  ;;  %p459_p8 = por %p458_p7, %p457_p5 }
  0x40   : > { %v172_v25 = vadd.f32 %v171_v21, %v141_v16  ;;  %v240_v27 = vadd.f32 %v239_v23, %v209_v18  ;;  %v157_v16 = vld [vmem:[%s631_s30 + $0xb0] sm:$0xff]  ;;  %v225_v18 = vmul.f32 %v156_v12, %v156_v12  ;;  %p460_p10 = pnand %p459_p8, %p453_p4 }
  0x42   : > { %v173_v29 = vadd.f32 %v172_v25, %v142_v20  ;;  %v241_v31 = vadd.f32 %v240_v27, %v210_v22  ;;  %v158_v20 = vld [vmem:[%s631_s30 + $0xb8] sm:$0xff]  ;;  %v226_v22 = vmul.f32 %v157_v16, %v157_v16 }
  0x44   : > { %v174_v33 = vadd.f32 %v173_v29, %v143_v24  ;;  %v242_v35 = vadd.f32 %v241_v31, %v211_v26  ;;  %v159_v24 = vld [vmem:[%s631_s30 + $0xc0] sm:$0xff]  ;;  %v227_v26 = vmul.f32 %v158_v20, %v158_v20 }
  0x46   : > { %v175_v37 = vadd.f32 %v174_v33, %v144_v28  ;;  %v243_v39 = vadd.f32 %v242_v35, %v212_v30  ;;  %v160_v28 = vld [vmem:[%s631_s30 + $0xc8] sm:$0xff]  ;;  %v228_v30 = vmul.f32 %v159_v24, %v159_v24 }
  0x48   : > { %v176_v41 = vadd.f32 %v175_v37, %v145_v32  ;;  %v244_v43 = vadd.f32 %v243_v39, %v213_v34  ;;  %v161_v32 = vld [vmem:[%s631_s30 + $0xd0] sm:$0xff]  ;;  %v229_v34 = vmul.f32 %v160_v28, %v160_v28 }
  0x4a   : > { %v177_v45 = vadd.f32 %v176_v41, %v146_v36  ;;  %v245_v47 = vadd.f32 %v244_v43, %v214_v38  ;;  %v162_v36 = vld [vmem:[%s631_s30 + $0xd8] sm:$0xff]  ;;  %v230_v38 = vmul.f32 %v161_v32, %v161_v32 }
  0x4c   : > { %v178_v49 = vadd.f32 %v177_v45, %v147_v40  ;;  %v246_v51 = vadd.f32 %v245_v47, %v215_v42  ;;  %v163_v40 = vld [vmem:[%s631_s30 + $0xe0] sm:$0xff]  ;;  %v231_v42 = vmul.f32 %v162_v36, %v162_v36 }
  0x4e   : > { %v179_v53 = vadd.f32 %v178_v49, %v148_v44  ;;  %v247_v55 = vadd.f32 %v246_v51, %v216_v46  ;;  %v164_v44 = vld [vmem:[%s631_s30 + $0xe8] sm:$0xff]  ;;  %v232_v46 = vmul.f32 %v163_v40, %v163_v40 }
  0x50   : > { %v180_v57 = vadd.f32 %v179_v53, %v149_v48  ;;  %v248_v59 = vadd.f32 %v247_v55, %v217_v50  ;;  %v165_v48 = vld [vmem:[%s631_s30 + $0xf0] sm:$0xff]  ;;  %v233_v50 = vmul.f32 %v164_v44, %v164_v44 }
  0x52   : > { %v181_v61 = vadd.f32 %v180_v57, %v150_v52  ;;  %v249_v63 = vadd.f32 %v248_v59, %v218_v54  ;;  %v166_v52 = vld [vmem:[%s631_s30 + $0xf8] sm:$0xff]  ;;  %v234_v54 = vmul.f32 %v165_v48, %v165_v48 }
  0x53   : > { %v235_v57 = vmul.f32 %v166_v52, %v166_v52 }
  0x54   : > { %v182_v1 = vadd.f32 %v181_v61, %v151_v56  ;;  %v250_v3 = vadd.f32 %v249_v63, %v219_v58 }
  0x56   : > { %v183_v5 = vadd.f32 %v182_v1, %v152_v60  ;;  %v251_v7 = vadd.f32 %v250_v3, %v220_v62 }
  0x58   : > { %v184_v9 = vadd.f32 %v183_v5, %v153_v0  ;;  %v252_v11 = vadd.f32 %v251_v7, %v221_v2 }
  0x5a   : > { %v185_v13 = vadd.f32 %v184_v9, %v154_v4  ;;  %v253_v15 = vadd.f32 %v252_v11, %v222_v6 }
  0x5c   : > { %v186_v17 = vadd.f32 %v185_v13, %v155_v8  ;;  %v254_v19 = vadd.f32 %v253_v15, %v223_v10 }
  0x5e   : > { %v187_v21 = vadd.f32 %v186_v17, %v156_v12  ;;  %v255_v23 = vadd.f32 %v254_v19, %v224_v14 }
  0x60   : > { %v188_v25 = vadd.f32 %v187_v21, %v157_v16  ;;  %v256_v27 = vadd.f32 %v255_v23, %v225_v18 }
  0x62   : > { %v189_v29 = vadd.f32 %v188_v25, %v158_v20  ;;  %v257_v31 = vadd.f32 %v256_v27, %v226_v22 }
  0x64   : > { %v190_v33 = vadd.f32 %v189_v29, %v159_v24  ;;  %v258_v35 = vadd.f32 %v257_v31, %v227_v26 }
  0x66   : > { %v191_v37 = vadd.f32 %v190_v33, %v160_v28  ;;  %v259_v39 = vadd.f32 %v258_v35, %v228_v30 }
  0x68   : > { %v192_v41 = vadd.f32 %v191_v37, %v161_v32  ;;  %v260_v43 = vadd.f32 %v259_v39, %v229_v34 }
  0x6a   : > { %v193_v45 = vadd.f32 %v192_v41, %v162_v36  ;;  %v261_v47 = vadd.f32 %v260_v43, %v230_v38 }
  0x6c   : > { %v194_v49 = vadd.f32 %v193_v45, %v163_v40  ;;  %v262_v51 = vadd.f32 %v261_v47, %v231_v42 }
  0x6e   : > { %v195_v53 = vadd.f32 %v194_v49, %v164_v44  ;;  %v263_v55 = vadd.f32 %v262_v51, %v232_v46 }
  0x70   : > { %v196_v56 = vadd.f32 %v195_v53, %v165_v48  ;;  %v264_v58 = vadd.f32 %v263_v55, %v233_v50 }
  0x72   : > { %v197_v59 = vadd.f32 %v196_v56, %v166_v52  ;;  %v265_v60 = vadd.f32 %v264_v58, %v234_v54 }
  0x74   : > { %v198_v61 = vrot.slane %v197_v59, 4  ;;  %v266_v62 = vadd.f32 %v265_v60, %v235_v57 }
  0x76   : > { %v199_v63 = vadd.f32 %v198_v61, %v197_v59  ;;  %v267_v0 = vrot.slane %v266_v62, 4 }
  0x78   : > { %v200_v1 = vrot.slane %v199_v63, 2  ;;  %v268_v2 = vadd.f32 %v267_v0, %v266_v62 }
  0x7a   : > { %v201_v3 = vadd.f32 %v200_v1, %v199_v63  ;;  %v269_v4 = vrot.slane %v268_v2, 2 }
  0x7c   : > { %v202_v5 = vrot.slane %v201_v3, 1  ;;  %v270_v6 = vadd.f32 %v269_v4, %v268_v2 }
  0x7e   : > { %v203_v7 = vadd.f32 %v202_v5, %v201_v3  ;;  %v271_v8 = vrot.slane %v270_v6, 1 }
  0x80   : > { %v272_v9 = vadd.f32 %v271_v8, %v270_v6 }
  0x82   : > { %v274_v10 = vsel %vm273_vm0, %v203_v7, %v272_v9 }
  0x83   : > { %275 = vst [vmem:[%s134_s25] sm:$0x3] %v274_v10 }
  0x84   : > { %463 = shalt.err (!%p460_p10)
}
  0x85   : > { %s464_s14 = scalar_lea.hbm %s288_s3, 32  ;;  %s468_s21 = scalar_lea.hbm %s712_s1, 64 }
  0x86   : > { %p465_p0 = scmp.ne.s32.totalorder %s288_s3, %s464_s14  ;;  %p469_p1 = scmp.lt.s32.totalorder %s288_s3, %s712_s1 }
  0x87   : > { %p470_p3 = scmp.lt.s32.totalorder %s468_s21, %s464_s14 }
  0x88   : > { %p466_p2 = pnand %p465_p0, %p721_p12 }
  0x89   : > { %p471_p6 = por %p470_p3, %p469_p1 }
  0x8a   : > { %p467_p9 = pneg %p466_p2 }
  0x8c   : > { %p472_p11 = pnand %p471_p6, %p467_p9 }
  0x8e   : > { %475 = shalt.err (!%p472_p11)
}
  0x8f   : > { %376 = dma.vmem_to_hbm [thread:$0]  (%p721_p12), %s671_s27, 32, %s288_s3, %s277_s4  }
  0x90 PF: > { %s302_s24 = sand.u32 1, %s502_s6   ;;  %p722_p13 = scmp.ne.s32.totalorder %s718_s19, 0 }
  0x91   : > { %p723_p4 = scmp.ge.s32.totalorder %s514_s9, 2  ;;  %s303_s26 = scalar_lea.sflag [#allocation4], %s302_s24 }
  0x93   : > { %p383_p5 = pnand %p723_p4, %p722_p13 }
  0x95   : > { %p384_p7 = pneg %p383_p5 }
  0x97   : > { %497 = dma.done.wait (%p384_p7), %s303_s26, 32  }
  0x98   : > { %499 = vsyncadd (%p384_p7), %s303_s26, 4294967264  ;;  %p14_p8 = scmp.ge.s32.totalorder %s555_s12, 4   ;;  %s724_s6 = smov %s506_s7 }
  0x99   : > { %s725_s7 = smov %s510_s8  ;;  %s726_s8 = smov %s567_s15 }
  0x9a   : > { %s727_s9 = smov %s555_s12  ;;  %16 = sbr.rel (!%p14_p8) target bundleno = 5 (0x5), region = 69 }
  0x9f   :  { %308 = vsyncpa [#allocation3], 1 }
  0xa0   :  { %310 = vsyncpa [#allocation3 + $0x1], 1 }
  0xa1   :  { %311 = vsyncpa [#allocation4], 1 }
  0xa2   :  { %313 = vsyncpa [#allocation4 + $0x1], 1 }

</bundles_post_ra>
